<compile_context>
chip_gen: v7x
topology: tpu7x:2x2x1
jax: 0.10.0
libtpu: 0.0.40
codegen_flags: <defaults>
</compile_context>

<pallas_src>
import functools

import jax
import jax.numpy as jnp
from jax import lax
from jax.experimental import pallas as pl
from jax.experimental.pallas import tpu as pltpu


def _dot_nt(a, w):
    """a: (M, K), w: (N, K)  ->  (M, N), i.e. a @ w^T without a transpose."""
    return lax.dot_general(
        a, w,
        dimension_numbers=(((1,), (1,)), ((), ())),
        preferred_element_type=jnp.float32)


def _head_kernel(x_ref, wk_ref, wq_ref, wv_ref, o_ref, *, head_size):
    # x_ref:  (BB, T, D)  batch-block of inputs
    # wk_ref: (H, D)      key weight   (nn.Linear layout: out, in)
    # wq_ref: (H, D)      query weight
    # wv_ref: (D, D)      value weight
    # o_ref:  (BB, T, D)  output
    BB, T, D = x_ref.shape
    H = wk_ref.shape[0]

    # Flatten batch+seq so a single MXU call handles the whole block's
    # projections (fills the MXU M-dimension, amortizes per-step overhead).
    # Leading-dim merge keeps the lane (last) dim intact -> no relayout.
    x2 = x_ref[...].reshape(BB * T, D)            # native dtype, no up-cast

    scale = 1.0 / (float(head_size) ** 0.5)
    q = (_dot_nt(x2, wq_ref[...]) * scale).reshape(BB, T, H)  # scale folded in
    k = _dot_nt(x2, wk_ref[...]).reshape(BB, T, H)
    v = _dot_nt(x2, wv_ref[...]).reshape(BB, T, D)

    # Batched Q @ K^T: contract the head dims directly (no explicit .T).
    scores = lax.dot_general(
        q, k,
        dimension_numbers=(((2,), (2,)), ((0,), (0,))),
        preferred_element_type=jnp.float32)        # (BB, T, T), f32

    # Causal mask (diagonal always unmasked -> no all--inf rows).
    row = lax.broadcasted_iota(jnp.int32, (T, T), 0)
    col = lax.broadcasted_iota(jnp.int32, (T, T), 1)
    causal = (col <= row)[None, :, :]
    scores = jnp.where(causal, scores, -jnp.inf)

    # Numerically-stable softmax along the key axis (kept in f32).
    m = jnp.max(scores, axis=-1, keepdims=True)
    e = jnp.exp(scores - m)
    denom = jnp.sum(e, axis=-1, keepdims=True)     # (BB, T, 1)
    # EUP approximate reciprocal + one Newton step (on a tiny (BB,T,1)
    # tensor) -> effectively free and back to full f32 precision.
    r = pl.reciprocal(denom, approx=True)
    r = r * (2.0 - denom * r)
    attn = e * r                                    # (BB, T, T), f32

    # attn @ V, batched; cast attn to V's dtype so the MXU sees matching
    # operand types (no-op for f32 inputs, correct path for bf16 weights).
    out = lax.dot_general(
        attn.astype(v.dtype), v,
        dimension_numbers=(((2,), (1,)), ((0,), (0,))),
        preferred_element_type=jnp.float32)         # (BB, T, D)

    o_ref[...] = out.astype(o_ref.dtype)


def head_forward(x, w_key, w_query, w_value, head_size, *, max_batch_block=8):
    """Pallas causal-attention Head.  x: (B, T, D)."""
    B, T, D = x.shape
    H = w_key.shape[0]
    assert w_key.shape == (H, D)
    assert w_query.shape == (H, D)
    assert w_value.shape == (D, D)

    # Batch-block size: process several batch elements per grid step so the
    # projection matmuls have BB*T rows feeding the MXU.
    bb = min(B, max_batch_block)
    while B % bb != 0:
        bb -= 1

    kernel = functools.partial(_head_kernel, head_size=head_size)

    return pl.pallas_call(
        kernel,
        out_shape=jax.ShapeDtypeStruct((B, T, D), x.dtype),
        grid_spec=pltpu.PrefetchScalarGridSpec(
            num_scalar_prefetch=0,
            grid=(pl.cdiv(B, bb),),
            in_specs=[
                pl.BlockSpec((bb, T, D), lambda b: (b, 0, 0)),  # x batch-block
                pl.BlockSpec((H, D), lambda b: (0, 0)),         # Wk (resident)
                pl.BlockSpec((H, D), lambda b: (0, 0)),         # Wq (resident)
                pl.BlockSpec((D, D), lambda b: (0, 0)),         # Wv (resident)
            ],
            out_specs=pl.BlockSpec((bb, T, D), lambda b: (b, 0, 0)),
        ),
        compiler_params=pltpu.CompilerParams(
            dimension_semantics=("parallel",)),
    )(x, w_key, w_query, w_value)


def head_reference(x, w_key, w_query, w_value, head_size):
    """Pure-JAX reference mirroring the PyTorch forward."""
    K = jnp.einsum("btd,hd->bth", x, w_key)
    Q = jnp.einsum("btd,hd->bth", x, w_query)
    V = jnp.einsum("btd,ed->bte", x, w_value)
    scores = jnp.einsum("bth,bsh->bts", Q, K) / (float(head_size) ** 0.5)
    T = x.shape[1]
    tril = jnp.tril(jnp.ones((T, T), dtype=bool))
    scores = jnp.where(tril, scores, -jnp.inf)
    attn = jax.nn.softmax(scores, axis=-1)
    return jnp.einsum("bts,bse->bte", attn, V)


if __name__ == "__main__":
    # Small shapes consistent with the module.
    B, T, D = 2, 8, 32          # batch, seq, embed_size
    head_size = 16
    context_window_size = 16    # >= T; tril buffer conceptually this size

    key = jax.random.PRNGKey(0)
    kx, kk, kq, kv = jax.random.split(key, 4)

    x = jax.random.normal(kx, (B, T, D), dtype=jnp.float32)
    # nn.Linear weights: (out_features, in_features)
    w_key = jax.random.normal(kk, (head_size, D), dtype=jnp.float32) * 0.1
    w_query = jax.random.normal(kq, (head_size, D), dtype=jnp.float32) * 0.1
    w_value = jax.random.normal(kv, (D, D), dtype=jnp.float32) * 0.1

    out = head_forward(x, w_key, w_query, w_value, head_size)
    out = jax.block_until_ready(out)

    ref = head_reference(x, w_key, w_query, w_value, head_size)
    assert out.shape == (B, T, D)
    assert jnp.allclose(out, ref, atol=1e-4, rtol=1e-4), "mismatch vs reference"

    print("KERNEL_OK")
</pallas_src>

<mosaic_0001>
module attributes {stable_mosaic.version = 11 : i64} {
  func.func @_head_kernel(%arg0: i32, %arg1: memref<2x8x32xf32, #tpu.memory_space<vmem>>, %arg2: memref<16x32xf32, #tpu.memory_space<vmem>>, %arg3: memref<16x32xf32, #tpu.memory_space<vmem>>, %arg4: memref<32x32xf32, #tpu.memory_space<vmem>>, %arg5: memref<2x8x32xf32, #tpu.memory_space<vmem>>) attributes {dimension_semantics = [#tpu.dimension_semantics<parallel>], iteration_bounds = array<i64: 1>, scalar_prefetch = 0 : i64, scratch_operands = 0 : i64, tpu.core_type = #tpu.core_type<tc>, window_params = [{transform_indices = @transform_0, window_bounds = array<i64: 2, 8, 32>}, {pipeline_mode = #tpu.pipeline_mode<synchronous>, transform_indices = @transform_1, window_bounds = array<i64: 16, 32>}, {pipeline_mode = #tpu.pipeline_mode<synchronous>, transform_indices = @transform_2, window_bounds = array<i64: 16, 32>}, {pipeline_mode = #tpu.pipeline_mode<synchronous>, transform_indices = @transform_3, window_bounds = array<i64: 32, 32>}, {transform_indices = @transform_4, window_bounds = array<i64: 2, 8, 32>}]} {
    %c0 = arith.constant 0 : index
    %c0_0 = arith.constant 0 : index
    %c0_1 = arith.constant 0 : index
    %0 = vector.load %arg1[%c0, %c0_0, %c0_1] : memref<2x8x32xf32, #tpu.memory_space<vmem>>, vector<2x8x32xf32>
    %1 = vector.shape_cast %0 : vector<2x8x32xf32> to vector<16x32xf32>
    %c0_2 = arith.constant 0 : index
    %c0_3 = arith.constant 0 : index
    %2 = vector.load %arg3[%c0_2, %c0_3] : memref<16x32xf32, #tpu.memory_space<vmem>>, vector<16x32xf32>
    %cst = arith.constant dense<0.000000e+00> : vector<16x16xf32>
    %3 = tpu.matmul %1, %2, %cst {dimension_numbers = #tpu.dot_dimension_numbers<[1], [1], [0], [0], [0, 0, 1, 0], [], []>} : vector<16x32xf32>, vector<16x32xf32>, vector<16x16xf32> -> vector<16x16xf32>
    %cst_4 = arith.constant 2.500000e-01 : f32
    %4 = vector.broadcast %cst_4 : f32 to vector<16x16xf32>
    %5 = arith.mulf %3, %4 : vector<16x16xf32>
    %6 = vector.shape_cast %5 : vector<16x16xf32> to vector<2x8x16xf32>
    %c0_5 = arith.constant 0 : index
    %c0_6 = arith.constant 0 : index
    %7 = vector.load %arg2[%c0_5, %c0_6] : memref<16x32xf32, #tpu.memory_space<vmem>>, vector<16x32xf32>
    %cst_7 = arith.constant dense<0.000000e+00> : vector<16x16xf32>
    %8 = tpu.matmul %1, %7, %cst_7 {dimension_numbers = #tpu.dot_dimension_numbers<[1], [1], [0], [0], [0, 0, 1, 0], [], []>} : vector<16x32xf32>, vector<16x32xf32>, vector<16x16xf32> -> vector<16x16xf32>
    %9 = vector.shape_cast %8 : vector<16x16xf32> to vector<2x8x16xf32>
    %c0_8 = arith.constant 0 : index
    %c0_9 = arith.constant 0 : index
    %10 = vector.load %arg4[%c0_8, %c0_9] : memref<32x32xf32, #tpu.memory_space<vmem>>, vector<32x32xf32>
    %cst_10 = arith.constant dense<0.000000e+00> : vector<16x32xf32>
    %11 = tpu.matmul %1, %10, %cst_10 {dimension_numbers = #tpu.dot_dimension_numbers<[1], [1], [0], [0], [0, 0, 1, 0], [], []>} : vector<16x32xf32>, vector<32x32xf32>, vector<16x32xf32> -> vector<16x32xf32>
    %12 = vector.shape_cast %11 : vector<16x32xf32> to vector<2x8x32xf32>
    %cst_11 = arith.constant dense<0.000000e+00> : vector<2x8x8xf32>
    %13 = tpu.matmul %6, %9, %cst_11 {dimension_numbers = #tpu.dot_dimension_numbers<[2], [2], [1], [1], [0, 0, 0, 1, 1, 1], [0], [0]>} : vector<2x8x16xf32>, vector<2x8x16xf32>, vector<2x8x8xf32> -> vector<2x8x8xf32>
    %14 = tpu.iota {dimensions = array<i32: 0>} : vector<8x8xi32>
    %15 = tpu.iota {dimensions = array<i32: 1>} : vector<8x8xi32>
    %16 = arith.cmpi sle, %15, %14 : vector<8x8xi32>
    %17 = vector.shape_cast %16 : vector<8x8xi1> to vector<1x8x8xi1>
    %cst_12 = arith.constant 0xFF800000 : f32
    %18 = vector.shape_cast %17 : vector<1x8x8xi1> to vector<1x8x8xi1>
    %19 = vector.broadcast %18 : vector<1x8x8xi1> to vector<2x8x8xi1>
    %20 = vector.broadcast %cst_12 : f32 to vector<2x8x8xf32>
    %21 = arith.select %19, %13, %20 : vector<2x8x8xi1>, vector<2x8x8xf32>
    %cst_13 = arith.constant dense<0xFF800000> : vector<2x8xf32>
    %22 = vector.multi_reduction <maximumf>, %21, %cst_13 [2] : vector<2x8x8xf32> to vector<2x8xf32>
    %23 = vector.shape_cast %22 : vector<2x8xf32> to vector<2x8x1xf32>
    %24 = vector.broadcast %23 : vector<2x8x1xf32> to vector<2x8x8xf32>
    %25 = arith.subf %21, %24 : vector<2x8x8xf32>
    %26 = math.exp %25 : vector<2x8x8xf32>
    %cst_14 = arith.constant dense<0.000000e+00> : vector<2x8xf32>
    %27 = vector.multi_reduction <add>, %26, %cst_14 [2] : vector<2x8x8xf32> to vector<2x8xf32>
    %28 = vector.shape_cast %27 : vector<2x8xf32> to vector<2x8x1xf32>
    %29 = tpu.reciprocal %28 {approx = true} : vector<2x8x1xf32> -> vector<2x8x1xf32>
    %30 = arith.mulf %28, %29 : vector<2x8x1xf32>
    %cst_15 = arith.constant 2.000000e+00 : f32
    %31 = vector.broadcast %cst_15 : f32 to vector<2x8x1xf32>
    %32 = arith.subf %31, %30 : vector<2x8x1xf32>
    %33 = arith.mulf %29, %32 : vector<2x8x1xf32>
    %34 = vector.broadcast %33 : vector<2x8x1xf32> to vector<2x8x8xf32>
    %35 = arith.mulf %26, %34 : vector<2x8x8xf32>
    %cst_16 = arith.constant dense<0.000000e+00> : vector<2x8x32xf32>
    %36 = tpu.matmul %35, %12, %cst_16 {dimension_numbers = #tpu.dot_dimension_numbers<[2], [1], [1], [2], [0, 0, 0, 1, 1, 2], [0], [0]>} : vector<2x8x8xf32>, vector<2x8x32xf32>, vector<2x8x32xf32> -> vector<2x8x32xf32>
    %c0_17 = arith.constant 0 : index
    %c0_18 = arith.constant 0 : index
    %c0_19 = arith.constant 0 : index
    %37 = vector.load %arg5[%c0_17, %c0_18, %c0_19] : memref<2x8x32xf32, #tpu.memory_space<vmem>>, vector<2x8x32xf32>
    tpu.vector_store %arg5[%c0_17, %c0_18, %c0_19], %36 {strides = array<i32>} : memref<2x8x32xf32, #tpu.memory_space<vmem>>, vector<2x8x32xf32>,
    return
  }
  func.func @transform_0(%arg0: i32) -> (i32, i32, i32) {
    %c0_i32 = arith.constant 0 : i32
    %c0_i32_0 = arith.constant 0 : i32
    %c0_i32_1 = arith.constant 0 : i32
    return %arg0, %c0_i32, %c0_i32_0 : i32, i32, i32
  }
  func.func @transform_1(%arg0: i32) -> (i32, i32) {
    %c0_i32 = arith.constant 0 : i32
    %c0_i32_0 = arith.constant 0 : i32
    %c0_i32_1 = arith.constant 0 : i32
    return %c0_i32, %c0_i32_0 : i32, i32
  }
  func.func @transform_2(%arg0: i32) -> (i32, i32) {
    %c0_i32 = arith.constant 0 : i32
    %c0_i32_0 = arith.constant 0 : i32
    %c0_i32_1 = arith.constant 0 : i32
    return %c0_i32, %c0_i32_0 : i32, i32
  }
  func.func @transform_3(%arg0: i32) -> (i32, i32) {
    %c0_i32 = arith.constant 0 : i32
    %c0_i32_0 = arith.constant 0 : i32
    %c0_i32_1 = arith.constant 0 : i32
    return %c0_i32, %c0_i32_0 : i32, i32
  }
  func.func @transform_4(%arg0: i32) -> (i32, i32, i32) {
    %c0_i32 = arith.constant 0 : i32
    %c0_i32_0 = arith.constant 0 : i32
    %c0_i32_1 = arith.constant 0 : i32
    return %arg0, %c0_i32, %c0_i32_0 : i32, i32, i32
  }
}

</mosaic_0001>

<bundles_post_ra>
// kernel: tpu_custom_call.1
= control target key start
LH: loop header
LB: loop body
LE: loop exit
PB: predicated region body
PF: predicated region fallthrough
CT: control target
= control target key end

     0   :  { %9 = vsyncpa [#allocation3], 0  ;;  %s1116_s0 = inlined_call_operand.hbm [shape: f32[2,8,32], index: 0, kind: input, shape index: {}]   ;;  %s1117_s1 = inlined_call_operand.hbm [shape: f32[16,32], index: 1, kind: input, shape index: {}]   ;;  %s1118_s2 = inlined_call_operand.hbm [shape: f32[16,32], index: 2, kind: input, shape index: {}]   ;;  %s1119_s3 = inlined_call_operand.hbm [shape: f32[32,32], index: 3, kind: input, shape index: {}]   ;;  %s1120_s4 = inlined_call_operand.hbm [shape: f32[2,8,32], index: 4, kind: output, shape index: {}]  }
   0x1   :  { %10 = vsyncpa [#allocation6], 0 }
   0x2   :  { %11 = vsyncpa [#allocation9], 0 }
   0x3   :  { %12 = vsyncpa [#allocation4], 0  ;;  %s945_s15 = smov [#allocation5]   ;;  %s946_s17 = smov [#allocation2]  }
   0x4   :  { %s30_s16 = sshll.u32 %s945_s15, 4  ;;  %s18_s18 = sshll.u32 %s946_s17, 4  ;;  %s31_s16 = int_to_ptr.vmem [resolvable:$true] %s30_s16  ;;  %s979_s18 = int_to_ptr.vmem [resolvable:$true] %s18_s18 }
   0x5   :  { %s827_s21 = scalar_lea.hbm %s1117_s1, 256 }
   0x6   :  { %p828_p0 = scmp.ne.s32.totalorder %s1117_s1, %s827_s21  ;;  %p831_p1 = scmp.lt.u32.totalorder %s827_s21, %s1117_s1 }
   0x8   :  { %p833_p2 = pnand %p831_p1, %p828_p0 }
   0xa   :  { %836 = shalt.err (!%p833_p2)
}
   0xb   :  { %s837_s26 = scalar_lea.vmem %s31_s16, 256  ;;  %p842_p4 = scmp.lt.s32.totalorder %s31_s16, %s31_s16 }
   0xc   :  { %p838_p3 = scmp.ne.s32.totalorder %s31_s16, %s837_s26  ;;  %p843_p5 = scmp.lt.s32.totalorder %s837_s26, %s837_s26 }
   0xe   :  { %p844_p6 = por %p843_p5, %p842_p4 }
  0x10   :  { %p845_p7 = pnand %p844_p6, %p838_p3 }
  0x12   :  { %848 = shalt.err (!%p845_p7)
}
  0x13   :  { %s947_s27 = smov 128   ;;  %s948_s28 = smov 8  }
  0x14   :  { %36 = dma.hbm_to_vmem [thread:$0]  %s1117_s1, 256, %s31_s16, [#allocation6], %s947_s27, %s947_s27, %s948_s28  }
  0x15   :  { %s849_s7 = scalar_lea.hbm %s1116_s0, 256 }
  0x16   :  { %p850_p8 = scmp.ne.s32.totalorder %s1116_s0, %s849_s7  ;;  %p853_p9 = scmp.lt.u32.totalorder %s849_s7, %s1116_s0 }
  0x18   :  { %p855_p10 = pnand %p853_p9, %p850_p8 }
  0x1a   :  { %858 = shalt.err (!%p855_p10)
}
  0x1b   :  { %s859_s12 = scalar_lea.vmem %s979_s18, 256  ;;  %p864_p12 = scmp.lt.s32.totalorder %s979_s18, %s979_s18 }
  0x1c   :  { %p860_p11 = scmp.ne.s32.totalorder %s979_s18, %s859_s12  ;;  %p865_p13 = scmp.lt.s32.totalorder %s859_s12, %s859_s12 }
  0x1e   :  { %p866_p0 = por %p865_p13, %p864_p12 }
  0x20   :  { %p867_p1 = pnand %p866_p0, %p860_p11 }
  0x22   :  { %870 = shalt.err (!%p867_p1)
}
  0x23   :  { %24 = dma.hbm_to_vmem [thread:$0]  %s1116_s0, 256, %s979_s18, [#allocation3], %s947_s27, %s947_s27, %s948_s28  }
  0x24   :  { %s949_s14 = smov [#allocation7]   ;;  %s950_s16 = smov [#allocation8]  }
  0x25   :  { %s42_s15 = sshll.u32 %s949_s14, 4  ;;  %s54_s17 = sshll.u32 %s950_s16, 4  ;;  %s43_s15 = int_to_ptr.vmem [resolvable:$true] %s42_s15  ;;  %s1016_s17 = int_to_ptr.vmem [resolvable:$true] %s54_s17 }
  0x26   :  { %s871_s21 = scalar_lea.hbm %s1118_s2, 256 }
  0x27   :  { %p872_p2 = scmp.ne.s32.totalorder %s1118_s2, %s871_s21  ;;  %p875_p3 = scmp.lt.u32.totalorder %s871_s21, %s1118_s2 }
  0x29   :  { %p877_p4 = pnand %p875_p3, %p872_p2 }
  0x2b   :  { %880 = shalt.err (!%p877_p4)
}
  0x2c   :  { %s881_s0 = scalar_lea.vmem %s43_s15, 256  ;;  %p886_p6 = scmp.lt.s32.totalorder %s43_s15, %s43_s15 }
  0x2d   :  { %p882_p5 = scmp.ne.s32.totalorder %s43_s15, %s881_s0  ;;  %p887_p7 = scmp.lt.s32.totalorder %s881_s0, %s881_s0 }
  0x2f   :  { %p888_p8 = por %p887_p7, %p886_p6 }
  0x31   :  { %p889_p9 = pnand %p888_p8, %p882_p5 }
  0x33   :  { %892 = shalt.err (!%p889_p9)
}
  0x34   :  { %48 = dma.hbm_to_vmem [thread:$0]  %s1118_s2, 256, %s43_s15, [#allocation6], %s947_s27, %s947_s27, %s948_s28  }
  0x35   :  { %s893_s5 = scalar_lea.hbm %s1119_s3, 512 }
  0x36   :  { %p894_p10 = scmp.ne.s32.totalorder %s1119_s3, %s893_s5  ;;  %p897_p11 = scmp.lt.u32.totalorder %s893_s5, %s1119_s3 }
  0x38   :  { %p899_p12 = pnand %p897_p11, %p894_p10 }
  0x3a   :  { %902 = shalt.err (!%p899_p12)
}
  0x3b   :  { %s903_s10 = scalar_lea.vmem %s1016_s17, 512  ;;  %p908_p0 = scmp.lt.s32.totalorder %s1016_s17, %s1016_s17 }
  0x3c   :  { %p904_p13 = scmp.ne.s32.totalorder %s1016_s17, %s903_s10  ;;  %p909_p1 = scmp.lt.s32.totalorder %s903_s10, %s903_s10 }
  0x3e   :  { %p910_p2 = por %p909_p1, %p908_p0 }
  0x40   :  { %p911_p3 = pnand %p910_p2, %p904_p13 }
  0x42   :  { %914 = shalt.err (!%p911_p3)
}
  0x43   :  { %60 = dma.hbm_to_vmem [thread:$0]  %s1119_s3, 512, %s1016_s17, [#allocation9], %s947_s27, %s947_s27, %s948_s28  }
  0x44   :  { %937 = dma.done.wait [#allocation3], 256  }
  0x45   :  { %938 = vsyncadd [#allocation3], 4294967040 }
  0x46   :  { %939 = dma.done.wait [#allocation6], 512  }
  0x47   :  { %940 = vsyncadd [#allocation6], 4294966784 }
  0x48   :  { %941 = dma.done.wait [#allocation9], 512  }
  0x49   :  { %942 = vsyncadd [#allocation9], 4294966784  ;;  %vm77_vm0 = vcmask 261120   ;;  %v167_v1 = vld [vmem:[#allocation5] sm:$0xff]  ;;  %v168_v2 = vld [vmem:[#allocation5 + $0x8] sm:$0xff]  ;;  %v951_v9 = vmov 0.0   ;;  %v494_v22 = vlaneseq }
  0x4a   :  { %vm1055_vm1 = vmpackc.low %vm77_vm0, %vm77_vm0  ;;  %v75_v3 = vld [vmem:[#allocation7] sm:$0xff]  ;;  %v792_v4 = vpack.c.bf16 %v168_v2, %v167_v1  ;;  %v76_v5 = vld [vmem:[#allocation7 + $0x8] sm:$0xff]  ;;  %vm952_vm2 = vmmov 0   ;;  %vm341_vm3 = vcmask 130048   ;;  %vm503_vm5 = vcmask 64512   ;;  %s953_s3 = smov [#allocation10]  }
  0x4b   :  { %v73_v6 = vld [vmem:[#allocation2] sm:$0xff]  ;;  %v786_v7 = vpack.c.bf16 %v76_v5, %v75_v3  ;;  %v74_v8 = vld [vmem:[#allocation2 + $0x8] sm:$0xff]  ;;  %v250_v16 = vld [vmem:[#allocation8] sm:$0xff]  ;;  %v495_v23 = vshrl.u32 %v494_v22, 7  ;;  %v497_v24 = vand.u32 127, %v494_v22  ;;  %s685_s12 = sshll.u32 %s953_s3, 4  ;;  %s686_s12 = int_to_ptr.vmem [resolvable:$true] %s685_s12 }
  0x4c   :  { %752 = vmatprep.mubr.msk.f32.mxu1 %vm77_vm0, %v73_v6  ;;  %745 = vmatprep.mubr.msk.f32.mxu0 %vm77_vm0, %v73_v6  ;;  %v251_v17 = vld [vmem:[#allocation8 + $0x8] sm:$0xff]  ;;  %v252_v18 = vld [vmem:[#allocation8 + $0x10] sm:$0xff]  ;;  %v253_v20 = vld [vmem:[#allocation8 + $0x18] sm:$0xff]  ;;  %s915_s1 = scalar_lea.vmem %s686_s12, 256  ;;  %p920_p5 = scmp.lt.s32.totalorder %s686_s12, %s686_s12 }
  0x4d   :  { %794 = vmatprep.subr.msk.bf16.mxu1 %vm1055_vm1, %v792_v4  ;;  %788 = vmatprep.subr.msk.bf16.mxu0 %vm1055_vm1, %v786_v7  ;;  %v798_v19 = vpack.c.bf16 %v251_v17, %v250_v16  ;;  %v804_v21 = vpack.c.bf16 %v253_v20, %v252_v18  ;;  %vm498_vm4 = vcmp.le.s32.totalorder %v497_v24, %v495_v23  ;;  %p916_p4 = scmp.ne.s32.totalorder %s686_s12, %s915_s1  ;;  %p921_p6 = scmp.lt.s32.totalorder %s915_s1, %s915_s1 }
  0x4e   :  { %797 = vmatpush3.bf16.xpose.msk.msra.mxu1 %vm1055_vm1, %v792_v4  ;;  %791 = vmatpush3.bf16.xpose.msk.msra.mxu0 %vm1055_vm1, %v786_v7 }
  0x4f   :  { %766 = vmatprep.subr.mxu1 %v951_v9  ;;  %800 = vmatprep.subr.msk.bf16.mxu0 %vm1055_vm1, %v798_v19  ;;  %p922_p7 = por %p921_p6, %p920_p5 }
  0x51   :  { %p923_p8 = pnand %p922_p7, %p916_p4 }
  0x55   :  { %753 = vmatmul.mubr.msk.f32.vlgmr.msra.gmra.mrb[0].mxu1 %vm77_vm0, %v74_v8  ;;  %746 = vmatmul.mubr.msk.f32.vlgmr.msra.gmra.mrb[0].mxu0 %vm77_vm0, %v74_v8 }
  0x56   :  { %763 = vmatprep.mubr.msk.f32.mxu0 %vm77_vm0, %v73_v6  ;;  %768 = vmatprep.mubr.msk.f32.mxu1 %vm952_vm2, %v951_v9 }
  0x57   :  { %803 = vmatpush3.bf16.xpose.msk.msra.mxu0 %vm1055_vm1, %v798_v19 }
  0x58   :  { %806 = vmatprep.subr.msk.bf16.mxu0 %vm1055_vm1, %v804_v21 }
  0x5f   :  { %809 = vmatpush3.bf16.xpose.msk.msra.mxu0 %vm1055_vm1, %v804_v21 }
  0x66   :  { %764 = vmatmul.mubr.msk.f32.vlgmr.msra.gmra.mrb[2].mxu0 %vm77_vm0, %v74_v8 }
 0x128   :  { %v754_v10 = vpop.f32.mrb[0].mxu1  ;;  %v747_v11 = vpop.f32.mrb[0].mxu0 }
 0x129   :  { %v241_v12 = vpop.f32.mrb[1].mxu1  ;;  %v156_v13 = vpop.f32.mrb[1].mxu0  ;;  %v166_v15 = vmul.f32 0.25, %v747_v11 }
 0x12a   :  { %767 = vmatpush3.xpose.msk.msra.mxu1 %vm341_vm3, %v241_v12  ;;  %v165_v14 = vmul.f32 0.25, %v156_v13 }
 0x12b   :  { %771 = vmatprep.subr.mxu1 %v951_v9 }
 0x12d   :  { %769 = vmatmul.mubr.msk.f32.vlgmr.msra.gmra.mrb[2].mxu1 %vm341_vm3, %v165_v14 }
 0x12e   :  { %772 = vmatpush3.xpose.msk.msra.mxu1 %vm341_vm3, %v754_v10  ;;  %773 = vmatprep.mubr.msk.f32.mxu1 %vm952_vm2, %v951_v9 }
 0x12f   :  { %776 = vmatprep.subr.mxu1 %v951_v9 }
 0x131   :  { %774 = vmatmul.mubr.msk.f32.vlgmr.msra.gmra.mrb[4].mxu1 %vm341_vm3, %v166_v15 }
 0x132   :  { %778 = vmatprep.mubr.msk.f32.mxu1 %vm952_vm2, %v951_v9 }
 0x139   :  { %v765_v43 = vpop.f32.mrb[2].mxu0 }
 0x13a   :  { %v332_v44 = vpop.f32.mrb[3].mxu0 }
 0x13b   :  { %777 = vmatpush3.msra.mxu1 %v332_v44 }
 0x13c   :  { %781 = vmatprep.subr.mxu1 %v951_v9 }
 0x200   :  { %v414_v25 = vpop.f32.mrb[2].mxu1 }
 0x201   :  { %v501_v26 = vsel %vm498_vm4, %v414_v25, -inf  ;;  %v770_v27 = vpop.f32.mrb[3].mxu1 }
 0x202   :  { %v504_v28 = vsel %vm503_vm5, %v501_v26, -inf }
 0x203   :  { %505 = vmax.xlane.f32.xlu0 %v504_v28 }
 0x204   :  { %v490_v29 = vpop.f32.mrb[4].mxu1 }
 0x205   :  { %v502_v30 = vsel %vm498_vm4, %v490_v29, -inf  ;;  %v775_v31 = vpop.f32.mrb[5].mxu1 }
 0x206   :  { %v507_v32 = vsel %vm503_vm5, %v502_v30, -inf }
 0x207   :  { %508 = vmax.xlane.f32.xlu0 %v507_v32 }
 0x290   :  { %v506_v33 = vpop.xlane.xlu0 %505 }
 0x291   :  { %v510_v34 = vsub.f32 %v501_v26, %v506_v33 }
 0x293   :  { %v512_v35 = vmul.f32 1.442695, %v510_v34 }
 0x294   :  { %v509_v36 = vpop.xlane.xlu0 %508 }
 0x295   :  { %819 = vpow2.f32 %v512_v35  ;;  %v511_v37 = vsub.f32 %v502_v30, %v509_v36 }
 0x297   :  { %v514_v38 = vmul.f32 1.442695, %v511_v37 }
 0x299   :  { %821 = vpow2.f32 %v514_v38 }
 0x29f   :  { %v820_v39 = vpop.eup %819 }
 0x2a0   :  { %v516_v40 = vsel %vm503_vm5, %v820_v39, 0.0 }
 0x2a1   :  { %517 = vadd.xlane.f32.xlu1 %v516_v40 }
 0x2a3   :  { %v822_v41 = vpop.eup %821 }
 0x2a4   :  { %v519_v42 = vsel %vm503_vm5, %v822_v41, 0.0 }
 0x2a5   :  { %520 = vadd.xlane.f32.xlu1 %v519_v42 }
 0x32e   :  { %v518_v45 = vpop.xlane.xlu1 %517 }
 0x32f   :  { %823 = vrcp.f32 %v518_v45 }
 0x332   :  { %v521_v46 = vpop.xlane.xlu1 %520 }
 0x333   :  { %825 = vrcp.f32 %v521_v46 }
 0x339   :  { %v824_v47 = vpop.eup %823 }
 0x33a   :  { %v524_v48 = vmul.f32 %v824_v47, %v518_v45 }
 0x33c   :  { %v526_v49 = vsub.f32 2.0, %v524_v48 }
 0x33d   :  { %v826_v50 = vpop.eup %825 }
 0x33e   :  { %v528_v51 = vmul.f32 %v824_v47, %v526_v49  ;;  %v525_v52 = vmul.f32 %v826_v50, %v521_v46 }
 0x340   :  { %v530_v53 = vmul.f32 %v820_v39, %v528_v51  ;;  %v527_v54 = vsub.f32 2.0, %v525_v52 }
 0x342   :  { %v529_v55 = vmul.f32 %v826_v50, %v527_v54  ;;  %779 = vmatmul.mubr.msk.f32.vlgmr.msra.gmra.mrb[6].mxu1 %vm503_vm5, %v530_v53 }
 0x343   :  { %782 = vmatpush3.msra.mxu1 %v765_v43  ;;  %783 = vmatprep.mubr.msk.f32.mxu1 %vm952_vm2, %v951_v9 }
 0x344   :  { %v531_v56 = vmul.f32 %v822_v41, %v529_v55 }
 0x346   :  { %784 = vmatmul.mubr.msk.f32.vlgmr.msra.gmra.mrb[8].mxu1 %vm503_vm5, %v531_v56 }
 0x415   :  { %v601_v57 = vpop.f32.mrb[6].mxu1 }
 0x416   :  { %678 = vst.msk [vmem:[#allocation10] sm:$0xff] %vm77_vm0, %v601_v57  ;;  %v780_v58 = vpop.f32.mrb[7].mxu1 }
 0x419   :  { %v674_v59 = vpop.f32.mrb[8].mxu1 }
 0x41a   :  { %679 = vst.msk [vmem:[#allocation10 + $0x8] sm:$0xff] %vm77_vm0, %v674_v59  ;;  %v785_v60 = vpop.f32.mrb[9].mxu1 }
 0x41b   :  { %926 = shalt.err (!%p923_p8)
}
 0x41c   :  { %s927_s15 = scalar_lea.hbm %s1120_s4, 256 }
 0x41d   :  { %p928_p9 = scmp.ne.s32.totalorder %s1120_s4, %s927_s15  ;;  %p931_p10 = scmp.lt.u32.totalorder %s927_s15, %s1120_s4 }
 0x41f   :  { %p933_p11 = pnand %p931_p10, %p928_p9 }
 0x421   :  { %936 = shalt.err (!%p933_p11)
}
 0x422   :  { %691 = dma.vmem_to_hbm [thread:$0]  %s686_s12, 256, %s1120_s4, [#allocation4], %s947_s27, %s947_s27, %s948_s28  }
 0x423   :  { %943 = dma.done.wait [#allocation4], 256  }
 0x424   :  { %944 = vsyncadd [#allocation4], 4294967040 }
 0x425   :  { %695 = vsyncpa [#allocation3], 1 }
 0x426   :  { %696 = vsyncpa [#allocation6], 1 }
 0x427   :  { %697 = vsyncpa [#allocation9], 1 }
 0x428   :  { %698 = vsyncpa [#allocation4], 1 }

</bundles_post_ra>
